<compile_context>
chip_gen: v6e
topology: v6e:2x2x1
jax: 0.10.0
libtpu: 0.0.40
codegen_flags: <defaults>
</compile_context>

<pallas_src>
import functools

import jax
import jax.numpy as jnp
from jax.experimental import pallas as pl
from jax.experimental.pallas import tpu as pltpu

_LANE = 128


def _round_up(n, m):
    return ((n + m - 1) // m) * m


def world_model_kernel(x_ref,
                       w1_ref, b1_ref,
                       w2_ref, b2_ref,
                       wh_ref, bh_ref,
                       y_ref):
    wdt = w1_ref.dtype                       # compute dtype of the MXU passes

    # hidden_embd: Linear -> ReLU -> Linear   (f32 accumulation on the MXU)
    x = x_ref[...].astype(wdt)
    h1 = jnp.dot(x, w1_ref[...], preferred_element_type=jnp.float32)
    h1 = jnp.maximum(h1 + b1_ref[...].astype(jnp.float32), 0.0)

    h2 = jnp.dot(h1.astype(wdt), w2_ref[...], preferred_element_type=jnp.float32)
    # outer F.relu
    h = jnp.maximum(h2 + b2_ref[...].astype(jnp.float32), 0.0)

    # fused (and 128-lane padded) heads: one lane-dense matmul + one dense store
    y = jnp.dot(h.astype(wdt), wh_ref[...], preferred_element_type=jnp.float32)
    y_ref[...] = (y + bh_ref[...].astype(jnp.float32)).astype(y_ref.dtype)


@functools.partial(jax.jit, static_argnames=("n_actions", "obs_shape", "block_b"))
def world_model_forward(hidden_state, params, *, n_actions, obs_shape, block_b=None):
    """hidden_state: (B, H) f32.  params: dict from init_params (weights are
    pre-transposed (in, out); heads pre-fused + pre-padded to 128 lanes).

    Returns (reward, o_next, terminated) in f32."""
    B, H = hidden_state.shape
    wh, bh = params["wh"], params["bh"]
    total = n_actions + obs_shape + 2
    total_padded = wh.shape[1]

    wdtype = params["w1"].dtype
    w_itemsize = jnp.dtype(wdtype).itemsize

    if block_b is None:
        row_align = 16 if (wdtype == jnp.bfloat16 and B >= 16) else 8
        if B <= 128:
            block_b = _round_up(B, row_align)      # whole batch, single step
        elif B <= 1024:
            block_b = 128                          # >=2 steps -> both v7x TCs
        else:
            block_b = 256
    grid = (pl.cdiv(B, block_b),)

    # Weight footprint (bytes) of one copy of all grid-constant operands.
    w_bytes = (2 * H * H + H * total_padded + 2 * H + total_padded) * w_itemsize
    # Single-buffer the grid-constant weights when double-buffering them would
    # be expensive (large H); their block index never changes so this is free.
    single_buffer_weights = (2 * w_bytes) > (8 << 20)

    def rep(shape):  # weights/biases replicated across the batch grid
        if single_buffer_weights:
            return pl.BlockSpec(shape, lambda i: (0, 0),
                                pipeline_mode=pl.Buffered(1))
        return pl.BlockSpec(shape, lambda i: (0, 0))

    in_specs = [
        pl.BlockSpec((block_b, H), lambda i: (i, 0)),   # x
        rep((H, H)), rep((1, H)),                       # W1, b1
        rep((H, H)), rep((1, H)),                       # W2, b2
        rep((H, total_padded)), rep((1, total_padded)), # fused head W / b
    ]
    out_specs = pl.BlockSpec((block_b, total_padded), lambda i: (i, 0))
    out_shape = jax.ShapeDtypeStruct((B, total_padded), jnp.float32)

    # Explicit VMEM budget (double-buffered x/y blocks, weights x1 or x2,
    # in-kernel f32 temporaries) with headroom; fits v7x's 64 MiB VMEM.
    act_bytes = 2 * block_b * (H * hidden_state.dtype.itemsize + total_padded * 4)
    scratch_bytes = block_b * (3 * H + total_padded) * 4
    vmem_needed = act_bytes + (1 if single_buffer_weights else 2) * w_bytes + scratch_bytes
    vmem_limit = int(min(max(int(vmem_needed * 1.25) + (4 << 20), 16 << 20), 100 << 20))

    flops = 2 * B * H * (2 * H + total_padded)
    bytes_accessed = (hidden_state.size * hidden_state.dtype.itemsize
                      + w_bytes + B * total_padded * 4)

    y = pl.pallas_call(
        world_model_kernel,
        grid_spec=pltpu.PrefetchScalarGridSpec(
            num_scalar_prefetch=0,
            grid=grid,
            in_specs=in_specs,
            out_specs=out_specs,
        ),
        out_shape=out_shape,
        compiler_params=pltpu.CompilerParams(
            dimension_semantics=("parallel",),
            vmem_limit_bytes=vmem_limit),
        cost_estimate=pl.CostEstimate(
            flops=int(flops), transcendentals=0,
            bytes_accessed=int(bytes_accessed)),
    )(hidden_state,
      params["w1"], params["b1"],
      params["w2"], params["b2"],
      wh, bh)

    reward = y[:, :n_actions]
    o_next = y[:, n_actions:n_actions + obs_shape]
    terminated = y[:, n_actions + obs_shape:total]
    return reward, o_next, terminated


def init_params(key, rnn_hidden_dim, n_actions, obs_shape, dtype=jnp.bfloat16):
    """PyTorch-default-style init (uniform +-1/sqrt(fan_in)).

    Weights stored pre-transposed (in, out).  The three head weights/biases
    are fused into one (H, total_padded) operand, zero-padded to a 128-lane
    multiple, ONCE here (hoisted out of the per-call forward)."""
    keys = jax.random.split(key, 10)
    H = rnn_hidden_dim
    total = n_actions + obs_shape + 2
    total_padded = _round_up(total, _LANE)

    def lin(kw, kb, fan_in, fan_out):
        bound = float(1.0 / (fan_in ** 0.5))
        w = jax.random.uniform(kw, (fan_in, fan_out), jnp.float32, -bound, bound)
        b = jax.random.uniform(kb, (1, fan_out), jnp.float32, -bound, bound)
        return w, b

    w1, b1 = lin(keys[0], keys[1], H, H)
    w2, b2 = lin(keys[2], keys[3], H, H)
    wr, br = lin(keys[4], keys[5], H, n_actions)
    wo, bo = lin(keys[6], keys[7], H, obs_shape)
    wt, bt = lin(keys[8], keys[9], H, 2)

    wh = jnp.concatenate([wr, wo, wt], axis=1)
    bh = jnp.concatenate([br, bo, bt], axis=1)
    pad = total_padded - total
    wh = jnp.pad(wh, ((0, 0), (0, pad)))
    bh = jnp.pad(bh, ((0, 0), (0, pad)))

    cast = lambda a: a.astype(dtype)
    return dict(w1=cast(w1), b1=cast(b1),
                w2=cast(w2), b2=cast(b2),
                wh=cast(wh), bh=cast(bh))


def reference_forward(x, p, n_actions, obs_shape):
    """Pure-JAX reference of the same math in f32 (weights up-cast)."""
    total = n_actions + obs_shape + 2
    f32 = jnp.float32
    h1 = jnp.maximum(x.astype(f32) @ p["w1"].astype(f32) + p["b1"].astype(f32), 0.0)
    h2 = h1 @ p["w2"].astype(f32) + p["b2"].astype(f32)
    h = jnp.maximum(h2, 0.0)
    y = h @ p["wh"].astype(f32) + p["bh"].astype(f32)
    return (y[:, :n_actions],
            y[:, n_actions:n_actions + obs_shape],
            y[:, n_actions + obs_shape:total])


if __name__ == "__main__":
    # Small shapes implied by the module's args:
    #   rnn_hidden_dim=32, n_actions=8, obs_shape=16, batch (n agents * bs)=8
    B, H, N_ACT, OBS = 8, 32, 8, 16

    key = jax.random.PRNGKey(0)
    k_x, k_p = jax.random.split(key)
    hidden_state = jax.random.normal(k_x, (B, H), jnp.float32)

    # --- f32 weights: exact-path check -------------------------------------
    params_f32 = init_params(k_p, H, N_ACT, OBS, dtype=jnp.float32)
    reward, o_next, terminated = world_model_forward(
        hidden_state, params_f32, n_actions=N_ACT, obs_shape=OBS)
    jax.block_until_ready((reward, o_next, terminated))

    r_ref, o_ref, t_ref = reference_forward(hidden_state, params_f32, N_ACT, OBS)
    assert reward.shape == (B, N_ACT)
    assert o_next.shape == (B, OBS)
    assert terminated.shape == (B, 2)
    assert jnp.allclose(reward, r_ref, atol=2e-5)
    assert jnp.allclose(o_next, o_ref, atol=2e-5)
    assert jnp.allclose(terminated, t_ref, atol=2e-5)

    # --- bf16 weights: fast-MXU path (activations cast to bf16 in-kernel) ---
    params_bf16 = init_params(k_p, H, N_ACT, OBS, dtype=jnp.bfloat16)
    r2, o2, t2 = world_model_forward(
        hidden_state, params_bf16, n_actions=N_ACT, obs_shape=OBS)
    jax.block_until_ready((r2, o2, t2))

    r2_ref, o2_ref, t2_ref = reference_forward(hidden_state, params_bf16, N_ACT, OBS)
    assert jnp.allclose(r2, r2_ref, atol=5e-2, rtol=5e-2)
    assert jnp.allclose(o2, o2_ref, atol=5e-2, rtol=5e-2)
    assert jnp.allclose(t2, t2_ref, atol=5e-2, rtol=5e-2)

    print("KERNEL_OK")
</pallas_src>

<mosaic_0001>
module attributes {stable_mosaic.version = 11 : i64} {
  func.func @world_model_kernel(%arg0: i32, %arg1: memref<8x32xf32, #tpu.memory_space<vmem>>, %arg2: memref<32x32xf32, #tpu.memory_space<vmem>>, %arg3: memref<1x32xf32, #tpu.memory_space<vmem>>, %arg4: memref<32x32xf32, #tpu.memory_space<vmem>>, %arg5: memref<1x32xf32, #tpu.memory_space<vmem>>, %arg6: memref<32x128xf32, #tpu.memory_space<vmem>>, %arg7: memref<1x128xf32, #tpu.memory_space<vmem>>, %arg8: memref<8x128xf32, #tpu.memory_space<vmem>>) attributes {dimension_semantics = [#tpu.dimension_semantics<parallel>], iteration_bounds = array<i64: 1>, scalar_prefetch = 0 : i64, scratch_operands = 0 : i64, tpu.core_type = #tpu.core_type<tc>, window_params = [{transform_indices = @transform_0, window_bounds = array<i64: 8, 32>}, {pipeline_mode = #tpu.pipeline_mode<synchronous>, transform_indices = @transform_1, window_bounds = array<i64: 32, 32>}, {pipeline_mode = #tpu.pipeline_mode<synchronous>, transform_indices = @transform_2, window_bounds = array<i64: 1, 32>}, {pipeline_mode = #tpu.pipeline_mode<synchronous>, transform_indices = @transform_3, window_bounds = array<i64: 32, 32>}, {pipeline_mode = #tpu.pipeline_mode<synchronous>, transform_indices = @transform_4, window_bounds = array<i64: 1, 32>}, {pipeline_mode = #tpu.pipeline_mode<synchronous>, transform_indices = @transform_5, window_bounds = array<i64: 32, 128>}, {pipeline_mode = #tpu.pipeline_mode<synchronous>, transform_indices = @transform_6, window_bounds = array<i64: 1, 128>}, {transform_indices = @transform_7, window_bounds = array<i64: 8, 128>}]} {
    %c0 = arith.constant 0 : index
    %c0_0 = arith.constant 0 : index
    %0 = vector.load %arg1[%c0, %c0_0] : memref<8x32xf32, #tpu.memory_space<vmem>>, vector<8x32xf32>
    %c0_1 = arith.constant 0 : index
    %c0_2 = arith.constant 0 : index
    %1 = vector.load %arg2[%c0_1, %c0_2] : memref<32x32xf32, #tpu.memory_space<vmem>>, vector<32x32xf32>
    %cst = arith.constant dense<0.000000e+00> : vector<8x32xf32>
    %2 = tpu.matmul %0, %1, %cst {dimension_numbers = #tpu.dot_dimension_numbers<[1], [0], [0], [1], [0, 0, 1, 1], [], []>} : vector<8x32xf32>, vector<32x32xf32>, vector<8x32xf32> -> vector<8x32xf32>
    %c0_3 = arith.constant 0 : index
    %c0_4 = arith.constant 0 : index
    %3 = vector.load %arg3[%c0_3, %c0_4] : memref<1x32xf32, #tpu.memory_space<vmem>>, vector<1x32xf32>
    %4 = vector.broadcast %3 : vector<1x32xf32> to vector<8x32xf32>
    %5 = arith.addf %2, %4 : vector<8x32xf32>
    %cst_5 = arith.constant 0.000000e+00 : f32
    %6 = vector.broadcast %cst_5 : f32 to vector<8x32xf32>
    %7 = arith.maximumf %5, %6 : vector<8x32xf32>
    %c0_6 = arith.constant 0 : index
    %c0_7 = arith.constant 0 : index
    %8 = vector.load %arg4[%c0_6, %c0_7] : memref<32x32xf32, #tpu.memory_space<vmem>>, vector<32x32xf32>
    %cst_8 = arith.constant dense<0.000000e+00> : vector<8x32xf32>
    %9 = tpu.matmul %7, %8, %cst_8 {dimension_numbers = #tpu.dot_dimension_numbers<[1], [0], [0], [1], [0, 0, 1, 1], [], []>} : vector<8x32xf32>, vector<32x32xf32>, vector<8x32xf32> -> vector<8x32xf32>
    %c0_9 = arith.constant 0 : index
    %c0_10 = arith.constant 0 : index
    %10 = vector.load %arg5[%c0_9, %c0_10] : memref<1x32xf32, #tpu.memory_space<vmem>>, vector<1x32xf32>
    %11 = vector.broadcast %10 : vector<1x32xf32> to vector<8x32xf32>
    %12 = arith.addf %9, %11 : vector<8x32xf32>
    %cst_11 = arith.constant 0.000000e+00 : f32
    %13 = vector.broadcast %cst_11 : f32 to vector<8x32xf32>
    %14 = arith.maximumf %12, %13 : vector<8x32xf32>
    %c0_12 = arith.constant 0 : index
    %c0_13 = arith.constant 0 : index
    %15 = vector.load %arg6[%c0_12, %c0_13] : memref<32x128xf32, #tpu.memory_space<vmem>>, vector<32x128xf32>
    %cst_14 = arith.constant dense<0.000000e+00> : vector<8x128xf32>
    %16 = tpu.matmul %14, %15, %cst_14 {dimension_numbers = #tpu.dot_dimension_numbers<[1], [0], [0], [1], [0, 0, 1, 1], [], []>} : vector<8x32xf32>, vector<32x128xf32>, vector<8x128xf32> -> vector<8x128xf32>
    %c0_15 = arith.constant 0 : index
    %c0_16 = arith.constant 0 : index
    %17 = vector.load %arg7[%c0_15, %c0_16] : memref<1x128xf32, #tpu.memory_space<vmem>>, vector<1x128xf32>
    %18 = vector.broadcast %17 : vector<1x128xf32> to vector<8x128xf32>
    %19 = arith.addf %16, %18 : vector<8x128xf32>
    %c0_17 = arith.constant 0 : index
    %c0_18 = arith.constant 0 : index
    %20 = vector.load %arg8[%c0_17, %c0_18] : memref<8x128xf32, #tpu.memory_space<vmem>>, vector<8x128xf32>
    tpu.vector_store %arg8[%c0_17, %c0_18], %19 {strides = array<i32>} : memref<8x128xf32, #tpu.memory_space<vmem>>, vector<8x128xf32>,
    return
  }
  func.func @transform_0(%arg0: i32) -> (i32, i32) {
    %c0_i32 = arith.constant 0 : i32
    %c0_i32_0 = arith.constant 0 : i32
    return %arg0, %c0_i32 : i32, i32
  }
  func.func @transform_1(%arg0: i32) -> (i32, i32) {
    %c0_i32 = arith.constant 0 : i32
    %c0_i32_0 = arith.constant 0 : i32
    %c0_i32_1 = arith.constant 0 : i32
    return %c0_i32, %c0_i32_0 : i32, i32
  }
  func.func @transform_2(%arg0: i32) -> (i32, i32) {
    %c0_i32 = arith.constant 0 : i32
    %c0_i32_0 = arith.constant 0 : i32
    %c0_i32_1 = arith.constant 0 : i32
    return %c0_i32, %c0_i32_0 : i32, i32
  }
  func.func @transform_3(%arg0: i32) -> (i32, i32) {
    %c0_i32 = arith.constant 0 : i32
    %c0_i32_0 = arith.constant 0 : i32
    %c0_i32_1 = arith.constant 0 : i32
    return %c0_i32, %c0_i32_0 : i32, i32
  }
  func.func @transform_4(%arg0: i32) -> (i32, i32) {
    %c0_i32 = arith.constant 0 : i32
    %c0_i32_0 = arith.constant 0 : i32
    %c0_i32_1 = arith.constant 0 : i32
    return %c0_i32, %c0_i32_0 : i32, i32
  }
  func.func @transform_5(%arg0: i32) -> (i32, i32) {
    %c0_i32 = arith.constant 0 : i32
    %c0_i32_0 = arith.constant 0 : i32
    %c0_i32_1 = arith.constant 0 : i32
    return %c0_i32, %c0_i32_0 : i32, i32
  }
  func.func @transform_6(%arg0: i32) -> (i32, i32) {
    %c0_i32 = arith.constant 0 : i32
    %c0_i32_0 = arith.constant 0 : i32
    %c0_i32_1 = arith.constant 0 : i32
    return %c0_i32, %c0_i32_0 : i32, i32
  }
  func.func @transform_7(%arg0: i32) -> (i32, i32) {
    %c0_i32 = arith.constant 0 : i32
    %c0_i32_0 = arith.constant 0 : i32
    return %arg0, %c0_i32 : i32, i32
  }
}

</mosaic_0001>

<bundles_post_ra>
// kernel: world_model_forward.1
= control target key start
LH: loop header
LB: loop body
LE: loop exit
PB: predicated region body
PF: predicated region fallthrough
CT: control target
= control target key end

     0   :  { %12 = vsyncpa [#allocation3], 0  ;;  %s578_s0 = inlined_call_operand.hbm [shape: f32[8,32], index: 0, kind: input, shape index: {}]   ;;  %s579_s1 = inlined_call_operand.hbm [shape: f32[32,32], index: 1, kind: input, shape index: {}]   ;;  %s580_s2 = inlined_call_operand.vmem [shape: f32[1,32], index: 2, kind: input, shape index: {}]   ;;  %s581_s3 = inlined_call_operand.hbm [shape: f32[32,32], index: 3, kind: input, shape index: {}]   ;;  %s582_s4 = inlined_call_operand.vmem [shape: f32[1,32], index: 4, kind: input, shape index: {}]   ;;  %s583_s5 = inlined_call_operand.hbm [shape: f32[32,128], index: 5, kind: input, shape index: {}]   ;;  %s584_s6 = inlined_call_operand.vmem [shape: f32[1,128], index: 6, kind: input, shape index: {}]   ;;  %s585_s7 = inlined_call_operand.vmem [shape: f32[8,128], index: 7, kind: output, shape index: {}]  }
   0x1   :  { %13 = vsyncpa [#allocation5], 0 }
   0x2   :  { %14 = vsyncpa [#allocation8], 0  ;;  %s491_s24 = smov [#allocation4]  }
   0x3   :  { %s30_s25 = sshll.u32 %s491_s24, 4  ;;  %s31_s25 = int_to_ptr.vmem [resolvable:$true] %s30_s25 }
   0x4   :  { %s413_s26 = scalar_lea.vmem %s31_s25, 512  ;;  %p418_p1 = scmp.lt.s32.totalorder %s31_s25, %s31_s25 }
   0x5   :  { %p414_p0 = scmp.ne.s32.totalorder %s31_s25, %s413_s26  ;;  %p419_p2 = scmp.lt.s32.totalorder %s413_s26, %s413_s26 }
   0x7   :  { %p420_p3 = por %p419_p2, %p418_p1 }
   0x9   :  { %p421_p4 = pnand %p420_p3, %p414_p0 }
   0xb   :  { %424 = shalt.err (!%p421_p4)
}
   0xc   :  { %s492_s27 = smov 128   ;;  %s493_s28 = smov 8  }
   0xd   :  { %36 = dma.hbm_to_vmem [thread:$0]  %s579_s1, 512, %s31_s25, [#allocation5], %s492_s27, %s492_s27, %s493_s28  }
   0xe   :  { %s494_s8 = smov [#allocation2]   ;;  %s495_s10 = smov [#allocation6]  }
   0xf   :  { %s21_s9 = sshll.u32 %s494_s8, 4  ;;  %s44_s11 = sshll.u32 %s495_s10, 4  ;;  %s22_s9 = int_to_ptr.vmem [resolvable:$true] %s21_s9  ;;  %s45_s11 = int_to_ptr.vmem [resolvable:$true] %s44_s11 }
  0x10   :  { %s433_s12 = scalar_lea.vmem %s22_s9, 128  ;;  %p438_p6 = scmp.lt.s32.totalorder %s22_s9, %s22_s9 }
  0x11   :  { %p434_p5 = scmp.ne.s32.totalorder %s22_s9, %s433_s12  ;;  %p439_p7 = scmp.lt.s32.totalorder %s433_s12, %s433_s12 }
  0x13   :  { %p440_p8 = por %p439_p7, %p438_p6 }
  0x15   :  { %p441_p9 = pnand %p440_p8, %p434_p5 }
  0x17   :  { %444 = shalt.err (!%p441_p9)
}
  0x18   :  { %24 = dma.hbm_to_vmem [thread:$0]  %s578_s0, 128, %s22_s9, [#allocation3]  }
  0x19   :  { %s453_s15 = scalar_lea.vmem %s45_s11, 512  ;;  %p458_p11 = scmp.lt.s32.totalorder %s45_s11, %s45_s11 }
  0x1a   :  { %p454_p10 = scmp.ne.s32.totalorder %s45_s11, %s453_s15  ;;  %p459_p12 = scmp.lt.s32.totalorder %s453_s15, %s453_s15 }
  0x1c   :  { %p460_p13 = por %p459_p12, %p458_p11 }
  0x1e   :  { %p461_p0 = pnand %p460_p13, %p454_p10 }
  0x20   :  { %464 = shalt.err (!%p461_p0)
}
  0x21   :  { %50 = dma.hbm_to_vmem [thread:$0]  %s581_s3, 512, %s45_s11, [#allocation5], %s492_s27, %s492_s27, %s493_s28  }
  0x22   :  { %s496_s17 = smov [#allocation7]  }
  0x23   :  { %s58_s18 = sshll.u32 %s496_s17, 4  ;;  %s59_s18 = int_to_ptr.vmem [resolvable:$true] %s58_s18 }
  0x24   :  { %s473_s19 = scalar_lea.vmem %s59_s18, 512  ;;  %p478_p2 = scmp.lt.s32.totalorder %s59_s18, %s59_s18 }
  0x25   :  { %p474_p1 = scmp.ne.s32.totalorder %s59_s18, %s473_s19  ;;  %p479_p3 = scmp.lt.s32.totalorder %s473_s19, %s473_s19 }
  0x27   :  { %p480_p4 = por %p479_p3, %p478_p2 }
  0x29   :  { %p481_p5 = pnand %p480_p4, %p474_p1 }
  0x2b   :  { %484 = shalt.err (!%p481_p5)
}
  0x2c   :  { %64 = dma.hbm_to_vmem [thread:$0]  %s583_s5, 512, %s59_s18, [#allocation8], %s492_s27, %s492_s27, %s493_s28  }
  0x2d   :  { %485 = dma.done.wait [#allocation3], 128  }
  0x2e   :  { %486 = vsyncadd [#allocation3], 4294967168 }
  0x2f   :  { %487 = dma.done.wait [#allocation5], 1024  }
  0x30   :  { %488 = vsyncadd [#allocation5], 4294966272 }
  0x31   :  { %489 = dma.done.wait [#allocation8], 512  }
  0x32   :  { %490 = vsyncadd [#allocation8], 4294966784  ;;  %v497_v0 = vmov 0.0   ;;  %vm498_vm0 = vmmov 0   ;;  %v83_v1 = vld [vmem:[#allocation4 + $0x18] sm:$0xff]  ;;  %v82_v2 = vld [vmem:[#allocation4 + $0x10] sm:$0xff] }
  0x33   :  { %364 = vmatprep.subr.mxu0 %v497_v0  ;;  %372 = vmatprep.mubr.msk.f32.mxu0 %vm498_vm0, %v497_v0  ;;  %v169_v3 = vld [vmem:[#allocation6 + $0x18] sm:$0xff]  ;;  %v81_v4 = vld [vmem:[#allocation4 + $0x8] sm:$0xff]  ;;  %v80_v5 = vld [vmem:[#allocation4] sm:$0xff]  ;;  %vm91_vm1 = vcmask 261120  }
  0x34   :  { %375 = vmatprep.subr.mxu1 %v497_v0  ;;  %383 = vmatprep.mubr.msk.f32.mxu1 %vm498_vm0, %v497_v0  ;;  %v79_v6 = vld [vmem:[#allocation2] sm:$0xff]  ;;  %v168_v7 = vld [vmem:[#allocation6 + $0x10] sm:$0xff]  ;;  %v167_v8 = vld [vmem:[#allocation6 + $0x8] sm:$0xff] }
  0x35   :  { %365 = vmatpush3.msra.mxu0 %v83_v1  ;;  %376 = vmatpush3.msra.mxu1 %v169_v3  ;;  %v166_v9 = vld [vmem:[#allocation6] sm:$0xff]  ;;  %v254_v10 = vld [vmem:[#allocation7 + $0x18] sm:$0xff]  ;;  %v253_v16 = vld [vmem:[#allocation7 + $0x10] sm:$0xff] }
  0x36   :  { %366 = vmatprep.subr.mxu0 %v497_v0  ;;  %377 = vmatprep.subr.mxu1 %v497_v0  ;;  %v343_v11 = vld [vmem:[%s580_s2] ss:$0 sm:$0xff]  ;;  %v252_v17 = vld [vmem:[#allocation7 + $0x8] sm:$0xff]  ;;  %v251_v18 = vld [vmem:[#allocation7] sm:$0xff] }
  0x37   :  { %367 = vmatpush3.msra.mxu0 %v82_v2  ;;  %378 = vmatpush3.msra.mxu1 %v168_v7  ;;  %v345_v19 = vld [vmem:[%s582_s4] ss:$0 sm:$0xff] }
  0x38   :  { %368 = vmatprep.subr.mxu0 %v497_v0  ;;  %379 = vmatprep.subr.mxu1 %v497_v0  ;;  %v347_v24 = vld [vmem:[%s584_s6] ss:$0 sm:$0xff] }
  0x39   :  { %369 = vmatpush3.msra.mxu0 %v81_v4  ;;  %380 = vmatpush3.msra.mxu1 %v167_v8 }
  0x3a   :  { %370 = vmatprep.subr.mxu0 %v497_v0  ;;  %381 = vmatprep.subr.mxu1 %v497_v0 }
  0x3b   :  { %371 = vmatpush3.msra.mxu0 %v80_v5  ;;  %382 = vmatpush3.msra.mxu1 %v166_v9 }
  0x3c   :  { %373 = vmatmul.mubr.msk.f32.vlgmr.msra.gmra.mxu0 %vm91_vm1, %v79_v6  ;;  %386 = vmatprep.subr.mxu0 %v497_v0 }
  0x3d   :  { %394 = vmatprep.mubr.msk.f32.mxu0 %vm498_vm0, %v497_v0  ;;  %387 = vmatpush3.msra.mxu0 %v254_v10 }
  0x3e   :  { %388 = vmatprep.subr.mxu0 %v497_v0 }
  0x3f   :  { %389 = vmatpush3.msra.mxu0 %v253_v16 }
  0x40   :  { %390 = vmatprep.subr.mxu0 %v497_v0 }
  0x41   :  { %391 = vmatpush3.msra.mxu0 %v252_v17 }
  0x42   :  { %392 = vmatprep.subr.mxu0 %v497_v0 }
  0x43   :  { %393 = vmatpush3.msra.mxu0 %v251_v18 }
  0xfc   :  { %v161_v12 = vpop.f32.mrf.mxu0 }
  0xfd   :  { %v162_v13 = vadd.f32 %v343_v11, %v161_v12 }
  0xfe   :  { %v374_v14 = vpop.f32.mrf.mxu0 }
  0xff   :  { %v165_v15 = vmax.f32 %v162_v13, 0.0 }
 0x101   :  { %384 = vmatmul.mubr.msk.f32.vlgmr.msra.gmra.mxu1 %vm91_vm1, %v165_v15 }
 0x1c1   :  { %v246_v20 = vpop.f32.mrf.mxu1 }
 0x1c2   :  { %v247_v21 = vadd.f32 %v345_v19, %v246_v20 }
 0x1c3   :  { %v385_v22 = vpop.f32.mrf.mxu1 }
 0x1c4   :  { %v250_v23 = vmax.f32 %v247_v21, 0.0 }
 0x1c6   :  { %395 = vmatmul.mubr.msk.f32.vlgmr.msra.gmra.mxu0 %vm91_vm1, %v250_v23 }
 0x286   :  { %v331_v25 = vpop.f32.mrf.mxu0 }
 0x287   :  { %v332_v26 = vadd.f32 %v347_v24, %v331_v25 }
 0x288   :  { %v396_v27 = vpop.f32.mrf.mxu0 }
 0x289   :  { %335 = vst [vmem:[%s585_s7] sm:$0xff] %v332_v26 }
 0x28a   :  { %340 = vsyncpa [#allocation3], 1 }
 0x28b   :  { %341 = vsyncpa [#allocation5], 1 }
 0x28c   :  { %342 = vsyncpa [#allocation8], 1 }

</bundles_post_ra>
